<compile_context>
chip_gen: v6e
topology: v6e:2x2x1
jax: 0.10.0
libtpu: 0.0.40
codegen_flags: <defaults>
</compile_context>

<pallas_src>
import jax
import jax.numpy as jnp
from jax.experimental import pallas as pl
from jax.experimental.pallas import tpu as pltpu

PAD = 128          # padded feature width (lane dimension)
NUM_LAYERS = 4     # fused(S|A), L1, L2, f


# ----------------------------------------------------------------------------
# Pallas kernel: the whole PolicyNet forward (4 fused Linear layers + ReLUs)
# ----------------------------------------------------------------------------
def policy_kernel(x_ref, w_ref, b_ref, out_ref):
    # x_ref : [BT, 128] f32   (state in lanes [0,stateDim), action right after)
    # w_ref : [4, 128, 128] bf16 stacked weights
    # b_ref : [8, 128] f32, row l = bias of layer l (rows 4..7 unused/zero)
    h = x_ref[...].astype(jnp.bfloat16)

    # Layer 0: block-diagonal fusion of S and A -> output lanes already hold
    # cat(relu(S(s)), relu(A(a))) in lanes 0..7.
    h = jnp.maximum(
        jnp.dot(h, w_ref[0], preferred_element_type=jnp.float32) + b_ref[0:1, :],
        0.0).astype(jnp.bfloat16)

    # L1 (operates directly on the concatenated lanes)
    h = jnp.maximum(
        jnp.dot(h, w_ref[1], preferred_element_type=jnp.float32) + b_ref[1:2, :],
        0.0).astype(jnp.bfloat16)

    # L2
    h = jnp.maximum(
        jnp.dot(h, w_ref[2], preferred_element_type=jnp.float32) + b_ref[2:3, :],
        0.0).astype(jnp.bfloat16)

    # f (no ReLU)
    out_ref[...] = (
        jnp.dot(h, w_ref[3], preferred_element_type=jnp.float32) + b_ref[3:4, :])


# ----------------------------------------------------------------------------
# Parameter init (deterministic, PyTorch-style uniform)
# ----------------------------------------------------------------------------
def linear_params(key, in_dim, out_dim):
    """Deterministic init mimicking torch.nn.Linear defaults. W stored (in, out)."""
    kw, kb = jax.random.split(key)
    bound = 1.0 / jnp.sqrt(jnp.float32(in_dim))
    W = jax.random.uniform(kw, (in_dim, out_dim), jnp.float32, -bound, bound)
    b = jax.random.uniform(kb, (out_dim,), jnp.float32, -bound, bound)
    return W, b


def init_policy_net(key, state_dim, action_dim):
    ks = jax.random.split(key, 5)
    return {
        "S":  linear_params(ks[0], state_dim, 4),
        "A":  linear_params(ks[1], action_dim, 4),
        "L1": linear_params(ks[2], 4 + 4, 6),
        "L2": linear_params(ks[3], 6, 4),
        "f":  linear_params(ks[4], 4, 1),
    }


# ----------------------------------------------------------------------------
# One-time packing of the 5 Linear layers into 2 kernel-ready tensors.
# Done ONCE at init and cached; never on the forward path.
# ----------------------------------------------------------------------------
def pack_policy_params(params, state_dim, action_dim):
    assert state_dim + action_dim <= PAD
    Ws, bs = params["S"]
    Wa, ba = params["A"]
    W1, b1 = params["L1"]
    W2, b2 = params["L2"]
    Wf, bf = params["f"]

    W = jnp.zeros((NUM_LAYERS, PAD, PAD), jnp.float32)
    # Layer 0: S and A fused block-diagonally (output lanes 0..3 = S, 4..7 = A).
    W = W.at[0, :state_dim, 0:4].set(Ws)
    W = W.at[0, state_dim:state_dim + action_dim, 4:8].set(Wa)
    W = W.at[1, :8, :6].set(W1)
    W = W.at[2, :6, :4].set(W2)
    W = W.at[3, :4, :1].set(Wf)

    b = jnp.zeros((8, PAD), jnp.float32)
    b = b.at[0, 0:4].set(bs).at[0, 4:8].set(ba)
    b = b.at[1, :6].set(b1)
    b = b.at[2, :4].set(b2)
    b = b.at[3, :1].set(bf)

    # bf16 weights for single-pass MXU + halved weight DMA; biases stay f32.
    return {"W": W.astype(jnp.bfloat16), "b": b}


def _round_up(x, m):
    return (x + m - 1) // m * m


# ----------------------------------------------------------------------------
# Forward: one jnp.pad + one pallas_call.
# (If this net is evaluated per-RL-step, batch/stack the calls into one
#  large-B forward rather than many tiny ones - launch overhead dominates.)
# ----------------------------------------------------------------------------
def policy_net_forward(X, packed, state_dim, action_dim, block_b=512):
    """Pallas PolicyNet.forward.  X: [B, state_dim+action_dim] f32 -> [B, 1]."""
    B = X.shape[0]
    f_in = state_dim + action_dim

    # Packed lane layout = [state | action]; when X is exactly [B, s+a] this is
    # X itself, so per-call prep is a single jnp.pad.
    if X.shape[1] == f_in:
        x_sa = X
    else:
        x_sa = jnp.concatenate([X[:, :state_dim], X[:, -action_dim:]], axis=1)

    bt = min(block_b, _round_up(B, 8))          # batch tile (multiple of 8)
    bp = _round_up(B, bt)                       # padded batch
    xp = jnp.pad(x_sa.astype(jnp.float32), ((0, bp - B), (0, PAD - f_in)))

    W, b = packed["W"], packed["b"]
    grid = (bp // bt,)

    flops = 2 * bp * PAD * PAD * NUM_LAYERS
    bytes_accessed = xp.size * 4 + W.size * 2 + b.size * 4 + bp * PAD * 4

    out_padded = pl.pallas_call(
        policy_kernel,
        out_shape=jax.ShapeDtypeStruct((bp, PAD), jnp.float32),
        grid=grid,
        in_specs=[
            pl.BlockSpec((bt, PAD), lambda i: (i, 0)),              # activations: streamed
            pl.BlockSpec((NUM_LAYERS, PAD, PAD), lambda i: (0, 0, 0)),  # weights: resident
            pl.BlockSpec((8, PAD), lambda i: (0, 0)),               # biases: resident
        ],
        out_specs=pl.BlockSpec((bt, PAD), lambda i: (i, 0)),
        compiler_params=pltpu.CompilerParams(
            dimension_semantics=("parallel",)),                     # v7x: shard batch tiles
        cost_estimate=pl.CostEstimate(
            flops=flops, transcendentals=0, bytes_accessed=bytes_accessed),
    )(xp, W, b)

    return out_padded[:B, :1]                   # [B, 1], same as the torch module


# ----------------------------------------------------------------------------
# Pure-JAX f32 reference mirroring the PyTorch forward exactly
# ----------------------------------------------------------------------------
def policy_net_reference(X, params, state_dim, action_dim):
    Ws, bs = params["S"]
    Wa, ba = params["A"]
    W1, b1 = params["L1"]
    W2, b2 = params["L2"]
    Wf, bf = params["f"]
    s = X[:, :state_dim]
    a = X[:, -action_dim:]
    s1 = jnp.maximum(s @ Ws + bs, 0.0)
    a1 = jnp.maximum(a @ Wa + ba, 0.0)
    y1 = jnp.concatenate([s1, a1], axis=1)
    l1 = jnp.maximum(y1 @ W1 + b1, 0.0)
    l2 = jnp.maximum(l1 @ W2 + b2, 0.0)
    return l2 @ Wf + bf


if __name__ == "__main__":
    state_dim, action_dim, batch = 8, 8, 8

    key = jax.random.PRNGKey(0)
    k_x, k_p = jax.random.split(key)
    X = jax.random.normal(k_x, (batch, state_dim + action_dim), jnp.float32)
    params = init_policy_net(k_p, state_dim, action_dim)
    packed = pack_policy_params(params, state_dim, action_dim)   # packed ONCE

    out = policy_net_forward(X, packed, state_dim, action_dim)
    out = jax.block_until_ready(out)

    ref = policy_net_reference(X, params, state_dim, action_dim)
    assert out.shape == (batch, 1), out.shape
    # bf16 MXU path (f32 accumulation) -> loosened tolerance vs the f32 reference.
    assert jnp.allclose(out, ref, atol=2e-2, rtol=2e-2), (out, ref)

    print("KERNEL_OK")
</pallas_src>

<mosaic_0001>
module attributes {stable_mosaic.version = 11 : i64} {
  func.func @policy_kernel(%arg0: i32, %arg1: memref<8x128xf32, #tpu.memory_space<vmem>>, %arg2: memref<4x128x128xbf16, #tpu.memory_space<vmem>>, %arg3: memref<8x128xf32, #tpu.memory_space<vmem>>, %arg4: memref<8x128xf32, #tpu.memory_space<vmem>>) attributes {dimension_semantics = [#tpu.dimension_semantics<parallel>], iteration_bounds = array<i64: 1>, scalar_prefetch = 0 : i64, scratch_operands = 0 : i64, tpu.core_type = #tpu.core_type<tc>, window_params = [{transform_indices = @transform_0, window_bounds = array<i64: 8, 128>}, {pipeline_mode = #tpu.pipeline_mode<synchronous>, transform_indices = @transform_1, window_bounds = array<i64: 4, 128, 128>}, {pipeline_mode = #tpu.pipeline_mode<synchronous>, transform_indices = @transform_2, window_bounds = array<i64: 8, 128>}, {transform_indices = @transform_3, window_bounds = array<i64: 8, 128>}]} {
    %c0 = arith.constant 0 : index
    %c0_0 = arith.constant 0 : index
    %0 = vector.load %arg1[%c0, %c0_0] : memref<8x128xf32, #tpu.memory_space<vmem>>, vector<8x128xf32>
    %1 = arith.truncf %0 : vector<8x128xf32> to vector<8x128xbf16>
    %c0_1 = arith.constant 0 : index
    %c0_2 = arith.constant 0 : index
    %c0_3 = arith.constant 0 : index
    %2 = vector.load %arg2[%c0_1, %c0_2, %c0_3] : memref<4x128x128xbf16, #tpu.memory_space<vmem>>, vector<1x128x128xbf16>
    %3 = vector.shape_cast %2 : vector<1x128x128xbf16> to vector<128x128xbf16>
    %cst = arith.constant dense<0.000000e+00> : vector<8x128xf32>
    %4 = tpu.matmul %1, %3, %cst {dimension_numbers = #tpu.dot_dimension_numbers<[1], [0], [0], [1], [0, 0, 1, 1], [], []>} : vector<8x128xbf16>, vector<128x128xbf16>, vector<8x128xf32> -> vector<8x128xf32>
    %c0_4 = arith.constant 0 : index
    %c0_5 = arith.constant 0 : index
    %5 = vector.load %arg3[%c0_4, %c0_5] : memref<8x128xf32, #tpu.memory_space<vmem>>, vector<1x128xf32>
    %6 = vector.broadcast %5 : vector<1x128xf32> to vector<8x128xf32>
    %7 = arith.addf %4, %6 : vector<8x128xf32>
    %cst_6 = arith.constant 0.000000e+00 : f32
    %8 = vector.broadcast %cst_6 : f32 to vector<8x128xf32>
    %9 = arith.maximumf %7, %8 : vector<8x128xf32>
    %10 = arith.truncf %9 : vector<8x128xf32> to vector<8x128xbf16>
    %c1 = arith.constant 1 : index
    %c0_7 = arith.constant 0 : index
    %c0_8 = arith.constant 0 : index
    %11 = vector.load %arg2[%c1, %c0_7, %c0_8] : memref<4x128x128xbf16, #tpu.memory_space<vmem>>, vector<1x128x128xbf16>
    %12 = vector.shape_cast %11 : vector<1x128x128xbf16> to vector<128x128xbf16>
    %cst_9 = arith.constant dense<0.000000e+00> : vector<8x128xf32>
    %13 = tpu.matmul %10, %12, %cst_9 {dimension_numbers = #tpu.dot_dimension_numbers<[1], [0], [0], [1], [0, 0, 1, 1], [], []>} : vector<8x128xbf16>, vector<128x128xbf16>, vector<8x128xf32> -> vector<8x128xf32>
    %c1_10 = arith.constant 1 : index
    %c0_11 = arith.constant 0 : index
    %14 = vector.load %arg3[%c1_10, %c0_11] : memref<8x128xf32, #tpu.memory_space<vmem>>, vector<1x128xf32>
    %15 = vector.broadcast %14 : vector<1x128xf32> to vector<8x128xf32>
    %16 = arith.addf %13, %15 : vector<8x128xf32>
    %cst_12 = arith.constant 0.000000e+00 : f32
    %17 = vector.broadcast %cst_12 : f32 to vector<8x128xf32>
    %18 = arith.maximumf %16, %17 : vector<8x128xf32>
    %19 = arith.truncf %18 : vector<8x128xf32> to vector<8x128xbf16>
    %c2 = arith.constant 2 : index
    %c0_13 = arith.constant 0 : index
    %c0_14 = arith.constant 0 : index
    %20 = vector.load %arg2[%c2, %c0_13, %c0_14] : memref<4x128x128xbf16, #tpu.memory_space<vmem>>, vector<1x128x128xbf16>
    %21 = vector.shape_cast %20 : vector<1x128x128xbf16> to vector<128x128xbf16>
    %cst_15 = arith.constant dense<0.000000e+00> : vector<8x128xf32>
    %22 = tpu.matmul %19, %21, %cst_15 {dimension_numbers = #tpu.dot_dimension_numbers<[1], [0], [0], [1], [0, 0, 1, 1], [], []>} : vector<8x128xbf16>, vector<128x128xbf16>, vector<8x128xf32> -> vector<8x128xf32>
    %c2_16 = arith.constant 2 : index
    %c0_17 = arith.constant 0 : index
    %23 = vector.load %arg3[%c2_16, %c0_17] : memref<8x128xf32, #tpu.memory_space<vmem>>, vector<1x128xf32>
    %24 = vector.broadcast %23 : vector<1x128xf32> to vector<8x128xf32>
    %25 = arith.addf %22, %24 : vector<8x128xf32>
    %cst_18 = arith.constant 0.000000e+00 : f32
    %26 = vector.broadcast %cst_18 : f32 to vector<8x128xf32>
    %27 = arith.maximumf %25, %26 : vector<8x128xf32>
    %28 = arith.truncf %27 : vector<8x128xf32> to vector<8x128xbf16>
    %c3 = arith.constant 3 : index
    %c0_19 = arith.constant 0 : index
    %c0_20 = arith.constant 0 : index
    %29 = vector.load %arg2[%c3, %c0_19, %c0_20] : memref<4x128x128xbf16, #tpu.memory_space<vmem>>, vector<1x128x128xbf16>
    %30 = vector.shape_cast %29 : vector<1x128x128xbf16> to vector<128x128xbf16>
    %cst_21 = arith.constant dense<0.000000e+00> : vector<8x128xf32>
    %31 = tpu.matmul %28, %30, %cst_21 {dimension_numbers = #tpu.dot_dimension_numbers<[1], [0], [0], [1], [0, 0, 1, 1], [], []>} : vector<8x128xbf16>, vector<128x128xbf16>, vector<8x128xf32> -> vector<8x128xf32>
    %c3_22 = arith.constant 3 : index
    %c0_23 = arith.constant 0 : index
    %32 = vector.load %arg3[%c3_22, %c0_23] : memref<8x128xf32, #tpu.memory_space<vmem>>, vector<1x128xf32>
    %33 = vector.broadcast %32 : vector<1x128xf32> to vector<8x128xf32>
    %34 = arith.addf %31, %33 : vector<8x128xf32>
    %c0_24 = arith.constant 0 : index
    %c0_25 = arith.constant 0 : index
    %35 = vector.load %arg4[%c0_24, %c0_25] : memref<8x128xf32, #tpu.memory_space<vmem>>, vector<8x128xf32>
    tpu.vector_store %arg4[%c0_24, %c0_25], %34 {strides = array<i32>} : memref<8x128xf32, #tpu.memory_space<vmem>>, vector<8x128xf32>,
    return
  }
  func.func @transform_0(%arg0: i32) -> (i32, i32) {
    %c0_i32 = arith.constant 0 : i32
    %c0_i32_0 = arith.constant 0 : i32
    return %arg0, %c0_i32 : i32, i32
  }
  func.func @transform_1(%arg0: i32) -> (i32, i32, i32) {
    %c0_i32 = arith.constant 0 : i32
    %c0_i32_0 = arith.constant 0 : i32
    %c0_i32_1 = arith.constant 0 : i32
    %c0_i32_2 = arith.constant 0 : i32
    return %c0_i32, %c0_i32_0, %c0_i32_1 : i32, i32, i32
  }
  func.func @transform_2(%arg0: i32) -> (i32, i32) {
    %c0_i32 = arith.constant 0 : i32
    %c0_i32_0 = arith.constant 0 : i32
    %c0_i32_1 = arith.constant 0 : i32
    return %c0_i32, %c0_i32_0 : i32, i32
  }
  func.func @transform_3(%arg0: i32) -> (i32, i32) {
    %c0_i32 = arith.constant 0 : i32
    %c0_i32_0 = arith.constant 0 : i32
    return %arg0, %c0_i32 : i32, i32
  }
}

</mosaic_0001>

<bundles_post_ra>
// kernel: tpu_custom_call.1
= control target key start
LH: loop header
LB: loop body
LE: loop exit
PB: predicated region body
PF: predicated region fallthrough
CT: control target
= control target key end

     0   :  { %8 = vsyncpa [#allocation3], 0  ;;  %s875_s0 = inlined_call_operand.hbm [shape: f32[8,128], index: 0, kind: input, shape index: {}]   ;;  %s876_s1 = inlined_call_operand.hbm [shape: bf16[4,128,128], index: 1, kind: input, shape index: {}]   ;;  %s877_s2 = inlined_call_operand.hbm [shape: f32[8,128], index: 2, kind: input, shape index: {}]   ;;  %s878_s3 = inlined_call_operand.hbm [shape: f32[8,128], index: 3, kind: output, shape index: {}]  }
   0x1   :  { %9 = vsyncpa [#allocation6], 0 }
   0x2   :  { %10 = vsyncpa [#allocation4], 0  ;;  %s795_s12 = smov [#allocation5]  }
   0x3   :  { %s26_s13 = sshll.u32 %s795_s12, 4  ;;  %s27_s13 = int_to_ptr.vmem [resolvable:$true] %s26_s13 }
   0x4   :  { %s717_s14 = scalar_lea.vmem %s27_s13, 4096  ;;  %p722_p1 = scmp.lt.s32.totalorder %s27_s13, %s27_s13 }
   0x5   :  { %p718_p0 = scmp.ne.s32.totalorder %s27_s13, %s717_s14  ;;  %p723_p2 = scmp.lt.s32.totalorder %s717_s14, %s717_s14 }
   0x7   :  { %p724_p3 = por %p723_p2, %p722_p1 }
   0x9   :  { %p725_p4 = pnand %p724_p3, %p718_p0 }
   0xb   :  { %728 = shalt.err (!%p725_p4)
}
   0xc   :  { %s796_s15 = smov 64   ;;  %s797_s16 = smov 4  }
   0xd   :  { %32 = dma.hbm_to_vmem [thread:$0]  %s876_s1, 4096, %s27_s13, [#allocation6], %s796_s15, %s796_s15, %s797_s16  }
   0xe   :  { %s798_s19 = smov [#allocation2]   ;;  %s799_s21 = smov [#allocation7]  }
   0xf   :  { %s17_s20 = sshll.u32 %s798_s19, 4  ;;  %s39_s22 = sshll.u32 %s799_s21, 4  ;;  %s18_s20 = int_to_ptr.vmem [resolvable:$true] %s17_s20  ;;  %s40_s22 = int_to_ptr.vmem [resolvable:$true] %s39_s22 }
  0x10   :  { %s737_s23 = scalar_lea.vmem %s18_s20, 128  ;;  %p742_p6 = scmp.lt.s32.totalorder %s18_s20, %s18_s20 }
  0x11   :  { %p738_p5 = scmp.ne.s32.totalorder %s18_s20, %s737_s23  ;;  %p743_p7 = scmp.lt.s32.totalorder %s737_s23, %s737_s23 }
  0x13   :  { %p744_p8 = por %p743_p7, %p742_p6 }
  0x15   :  { %p745_p9 = pnand %p744_p8, %p738_p5 }
  0x17   :  { %748 = shalt.err (!%p745_p9)
}
  0x18   :  { %20 = dma.hbm_to_vmem [thread:$0]  %s875_s0, 128, %s18_s20, [#allocation3]  }
  0x19   :  { %s757_s26 = scalar_lea.vmem %s40_s22, 128  ;;  %p762_p11 = scmp.lt.s32.totalorder %s40_s22, %s40_s22 }
  0x1a   :  { %p758_p10 = scmp.ne.s32.totalorder %s40_s22, %s757_s26  ;;  %p763_p12 = scmp.lt.s32.totalorder %s757_s26, %s757_s26 }
  0x1c   :  { %p764_p13 = por %p763_p12, %p762_p11 }
  0x1e   :  { %p765_p0 = pnand %p764_p13, %p758_p10 }
  0x20   :  { %768 = shalt.err (!%p765_p0)
}
  0x21   :  { %42 = dma.hbm_to_vmem [thread:$0]  %s877_s2, 128, %s40_s22, [#allocation6]  }
  0x22   :  { %789 = dma.done.wait [#allocation3], 128  }
  0x23   :  { %790 = vsyncadd [#allocation3], 4294967168 }
  0x24   :  { %791 = dma.done.wait [#allocation6], 4224  }
  0x25   :  { %792 = vsyncadd [#allocation6], 4294963072  ;;  %v800_v0 = vmov 0.0   ;;  %vm801_vm0 = vmmov 0   ;;  %v677_v1 = vld [vmem:[#allocation5 + $0x38] sm:$0xff]   ;;  %v678_v2 = vld [vmem:[#allocation5 + $0x30] sm:$0xff]  }
  0x26   :  { %589 = vmatprep.subr.bf16.mxu0 %v800_v0  ;;  %605 = vmatprep.mubr.msk.bf16.mxu0 %vm801_vm0, %v800_v0  ;;  %v679_v3 = vld [vmem:[#allocation5 + $0x28] sm:$0xff]   ;;  %v685_v4 = vld [vmem:[#allocation5 + $0x78] sm:$0xff]   ;;  %v680_v5 = vld [vmem:[#allocation5 + $0x20] sm:$0xff]   ;;  %s802_s0 = smov [#allocation8]  }
  0x27   :  { %609 = vmatprep.subr.bf16.mxu1 %v800_v0  ;;  %625 = vmatprep.mubr.msk.bf16.mxu1 %vm801_vm0, %v800_v0  ;;  %v686_v6 = vld [vmem:[#allocation5 + $0x70] sm:$0xff]   ;;  %v681_v7 = vld [vmem:[#allocation5 + $0x18] sm:$0xff]   ;;  %v687_v8 = vld [vmem:[#allocation5 + $0x68] sm:$0xff]   ;;  %s507_s2 = sshll.u32 %s802_s0, 4  ;;  %s508_s2 = int_to_ptr.vmem [resolvable:$true] %s507_s2 }
  0x28   :  { %590 = vmatpush3.bf16.msra.mxu0 %v677_v1  ;;  %610 = vmatpush3.bf16.msra.mxu1 %v685_v4  ;;  %v682_v9 = vld [vmem:[#allocation5 + $0x10] sm:$0xff]   ;;  %v688_v10 = vld [vmem:[#allocation5 + $0x60] sm:$0xff]   ;;  %v683_v11 = vld [vmem:[#allocation5 + $0x8] sm:$0xff]   ;;  %s769_s28 = scalar_lea.vmem %s508_s2, 128  ;;  %p774_p2 = scmp.lt.s32.totalorder %s508_s2, %s508_s2 }
  0x29   :  { %591 = vmatprep.subr.bf16.mxu0 %v800_v0  ;;  %611 = vmatprep.subr.bf16.mxu1 %v800_v0  ;;  %v689_v12 = vld [vmem:[#allocation5 + $0x58] sm:$0xff]   ;;  %v684_v13 = vld [vmem:[#allocation5] sm:$0xff]   ;;  %v690_v15 = vld [vmem:[#allocation5 + $0x50] sm:$0xff]   ;;  %p770_p1 = scmp.ne.s32.totalorder %s508_s2, %s769_s28  ;;  %p775_p3 = scmp.lt.s32.totalorder %s769_s28, %s769_s28 }
  0x2a   :  { %v53_v14 = vld [vmem:[#allocation2] sm:$0xff]  ;;  %v691_v17 = vld [vmem:[#allocation5 + $0x48] sm:$0xff]   ;;  %v692_v18 = vld [vmem:[#allocation5 + $0x40] sm:$0xff]  }
  0x2b   :  { %v54_v16 = vpack.c.bf16 %v53_v14, %v53_v14  ;;  %v693_v19 = vld [vmem:[#allocation5 + $0xb8] sm:$0xff]   ;;  %v694_v20 = vld [vmem:[#allocation5 + $0xb0] sm:$0xff]   ;;  %v695_v21 = vld [vmem:[#allocation5 + $0xa8] sm:$0xff]   ;;  %p776_p4 = por %p775_p3, %p774_p2 }
  0x2c   :  { %592 = vmatpush3.bf16.msra.mxu0 %v678_v2  ;;  %612 = vmatpush3.bf16.msra.mxu1 %v686_v6  ;;  %v696_v22 = vld [vmem:[#allocation5 + $0xa0] sm:$0xff]   ;;  %v697_v23 = vld [vmem:[#allocation5 + $0x98] sm:$0xff]   ;;  %v698_v24 = vld [vmem:[#allocation5 + $0x90] sm:$0xff]  }
  0x2d   :  { %593 = vmatprep.subr.bf16.mxu0 %v800_v0  ;;  %613 = vmatprep.subr.bf16.mxu1 %v800_v0  ;;  %v517_v25 = vld [vmem:[#allocation7] ss:$0 sm:$0xff]  ;;  %v699_v33 = vld [vmem:[#allocation5 + $0x88] sm:$0xff]   ;;  %v701_v35 = vld [vmem:[#allocation5 + $0xf8] sm:$0xff]   ;;  %p777_p5 = pnand %p776_p4, %p770_p1 }
  0x2e   :  { %v700_v34 = vld [vmem:[#allocation5 + $0x80] sm:$0xff]   ;;  %v702_v36 = vld [vmem:[#allocation5 + $0xf0] sm:$0xff]   ;;  %v703_v37 = vld [vmem:[#allocation5 + $0xe8] sm:$0xff]  }
  0x2f   :  { %v704_v38 = vld [vmem:[#allocation5 + $0xe0] sm:$0xff]   ;;  %v705_v39 = vld [vmem:[#allocation5 + $0xd8] sm:$0xff]   ;;  %v706_v40 = vld [vmem:[#allocation5 + $0xd0] sm:$0xff]  }
  0x30   :  { %594 = vmatpush3.bf16.msra.mxu0 %v679_v3  ;;  %614 = vmatpush3.bf16.msra.mxu1 %v687_v8  ;;  %v526_v41 = vld [vmem:[#allocation7 + $0x1] ss:$0 sm:$0xff]  ;;  %v707_v49 = vld [vmem:[#allocation5 + $0xc8] sm:$0xff]   ;;  %v535_v51 = vld [vmem:[#allocation7 + $0x2] ss:$0 sm:$0xff] }
  0x31   :  { %595 = vmatprep.subr.bf16.mxu0 %v800_v0  ;;  %615 = vmatprep.subr.bf16.mxu1 %v800_v0  ;;  %v708_v50 = vld [vmem:[#allocation5 + $0xc0] sm:$0xff]  }
  0x32   :  { %v544_v59 = vld [vmem:[#allocation7 + $0x3] ss:$0 sm:$0xff] }
  0x34   :  { %596 = vmatpush3.bf16.msra.mxu0 %v680_v5  ;;  %616 = vmatpush3.bf16.msra.mxu1 %v688_v10 }
  0x35   :  { %597 = vmatprep.subr.bf16.mxu0 %v800_v0  ;;  %617 = vmatprep.subr.bf16.mxu1 %v800_v0 }
  0x38   :  { %598 = vmatpush3.bf16.msra.mxu0 %v681_v7  ;;  %618 = vmatpush3.bf16.msra.mxu1 %v689_v12 }
  0x39   :  { %599 = vmatprep.subr.bf16.mxu0 %v800_v0  ;;  %619 = vmatprep.subr.bf16.mxu1 %v800_v0 }
  0x3c   :  { %600 = vmatpush3.bf16.msra.mxu0 %v682_v9  ;;  %620 = vmatpush3.bf16.msra.mxu1 %v690_v15 }
  0x3d   :  { %601 = vmatprep.subr.bf16.mxu0 %v800_v0  ;;  %621 = vmatprep.subr.bf16.mxu1 %v800_v0 }
  0x40   :  { %602 = vmatpush3.bf16.msra.mxu0 %v683_v11  ;;  %622 = vmatpush3.bf16.msra.mxu1 %v691_v17 }
  0x41   :  { %603 = vmatprep.subr.bf16.mxu0 %v800_v0  ;;  %623 = vmatprep.subr.bf16.mxu1 %v800_v0 }
  0x44   :  { %604 = vmatpush3.bf16.msra.mxu0 %v684_v13  ;;  %624 = vmatpush3.bf16.msra.mxu1 %v692_v18 }
  0x45   :  { %629 = vmatprep.subr.bf16.mxu0 %v800_v0  ;;  %649 = vmatprep.subr.bf16.mxu1 %v800_v0 }
  0x47   :  { %606 = vmatmul.mubr.bf16.vlgmr.msra.gmra.mxu0 %v54_v16 }
  0x48   :  { %645 = vmatprep.mubr.msk.bf16.mxu0 %vm801_vm0, %v800_v0  ;;  %630 = vmatpush3.bf16.msra.mxu0 %v693_v19 }
  0x49   :  { %631 = vmatprep.subr.bf16.mxu0 %v800_v0 }
  0x4c   :  { %632 = vmatpush3.bf16.msra.mxu0 %v694_v20 }
  0x4d   :  { %633 = vmatprep.subr.bf16.mxu0 %v800_v0 }
  0x50   :  { %634 = vmatpush3.bf16.msra.mxu0 %v695_v21 }
  0x51   :  { %635 = vmatprep.subr.bf16.mxu0 %v800_v0 }
  0x54   :  { %636 = vmatpush3.bf16.msra.mxu0 %v696_v22 }
  0x55   :  { %637 = vmatprep.subr.bf16.mxu0 %v800_v0 }
  0x58   :  { %638 = vmatpush3.bf16.msra.mxu0 %v697_v23 }
  0x59   :  { %639 = vmatprep.subr.bf16.mxu0 %v800_v0 }
  0x5c   :  { %640 = vmatpush3.bf16.msra.mxu0 %v698_v24 }
  0x5d   :  { %641 = vmatprep.subr.bf16.mxu0 %v800_v0 }
  0x60   :  { %642 = vmatpush3.bf16.msra.mxu0 %v699_v33 }
  0x61   :  { %643 = vmatprep.subr.bf16.mxu0 %v800_v0 }
  0x64   :  { %644 = vmatpush3.bf16.msra.mxu0 %v700_v34 }
 0x107   :  { %v158_v26 = vpop.f32.mrf.mxu0 }
 0x108   :  { %v159_v27 = vadd.f32 %v517_v25, %v158_v26 }
 0x109   :  { %v607_v28 = vpop.f32.mrf.mxu0 }
 0x10a   :  { %v164_v29 = vmax.f32 %v159_v27, 0.0 }
 0x10b   :  { %v161_v30 = vpop.f32.mrf.mxu0 }
 0x10c   :  { %v165_v31 = vpack.c.bf16 %v164_v29, %v164_v29 }
 0x10d   :  { %v608_v32 = vpop.f32.mrf.mxu0 }
 0x10e   :  { %626 = vmatmul.mubr.bf16.vlgmr.msra.gmra.mxu1 %v165_v31 }
 0x10f   :  { %665 = vmatprep.mubr.msk.bf16.mxu1 %vm801_vm0, %v800_v0  ;;  %650 = vmatpush3.bf16.msra.mxu1 %v701_v35 }
 0x110   :  { %651 = vmatprep.subr.bf16.mxu1 %v800_v0 }
 0x113   :  { %652 = vmatpush3.bf16.msra.mxu1 %v702_v36 }
 0x114   :  { %653 = vmatprep.subr.bf16.mxu1 %v800_v0 }
 0x117   :  { %654 = vmatpush3.bf16.msra.mxu1 %v703_v37 }
 0x118   :  { %655 = vmatprep.subr.bf16.mxu1 %v800_v0 }
 0x11b   :  { %656 = vmatpush3.bf16.msra.mxu1 %v704_v38 }
 0x11c   :  { %657 = vmatprep.subr.bf16.mxu1 %v800_v0 }
 0x11f   :  { %658 = vmatpush3.bf16.msra.mxu1 %v705_v39 }
 0x120   :  { %659 = vmatprep.subr.bf16.mxu1 %v800_v0 }
 0x123   :  { %660 = vmatpush3.bf16.msra.mxu1 %v706_v40 }
 0x124   :  { %661 = vmatprep.subr.bf16.mxu1 %v800_v0 }
 0x127   :  { %662 = vmatpush3.bf16.msra.mxu1 %v707_v49 }
 0x128   :  { %663 = vmatprep.subr.bf16.mxu1 %v800_v0 }
 0x12b   :  { %664 = vmatpush3.bf16.msra.mxu1 %v708_v50 }
 0x1ce   :  { %v270_v42 = vpop.f32.mrf.mxu1 }
 0x1cf   :  { %v271_v43 = vadd.f32 %v526_v41, %v270_v42 }
 0x1d0   :  { %v627_v44 = vpop.f32.mrf.mxu1 }
 0x1d1   :  { %v276_v45 = vmax.f32 %v271_v43, 0.0 }
 0x1d2   :  { %v273_v46 = vpop.f32.mrf.mxu1 }
 0x1d3   :  { %v277_v47 = vpack.c.bf16 %v276_v45, %v276_v45 }
 0x1d4   :  { %v628_v48 = vpop.f32.mrf.mxu1 }
 0x1d5   :  { %646 = vmatmul.mubr.bf16.vlgmr.msra.gmra.mxu0 %v277_v47 }
 0x295   :  { %v382_v52 = vpop.f32.mrf.mxu0 }
 0x296   :  { %v383_v53 = vadd.f32 %v535_v51, %v382_v52 }
 0x297   :  { %v647_v54 = vpop.f32.mrf.mxu0 }
 0x298   :  { %v388_v55 = vmax.f32 %v383_v53, 0.0 }
 0x299   :  { %v385_v56 = vpop.f32.mrf.mxu0 }
 0x29a   :  { %v389_v57 = vpack.c.bf16 %v388_v55, %v388_v55 }
 0x29b   :  { %v648_v58 = vpop.f32.mrf.mxu0 }
 0x29c   :  { %666 = vmatmul.mubr.bf16.vlgmr.msra.gmra.mxu1 %v389_v57 }
 0x35c   :  { %v494_v60 = vpop.f32.mrf.mxu1 }
 0x35d   :  { %v495_v61 = vadd.f32 %v544_v59, %v494_v60 }
 0x35e   :  { %v667_v62 = vpop.f32.mrf.mxu1 }
 0x35f   :  { %500 = vst [vmem:[#allocation8] sm:$0xff] %v495_v61 }
 0x360   :  { %v497_v63 = vpop.f32.mrf.mxu1 }
 0x361   :  { %780 = shalt.err (!%p777_p5)
}
 0x362   :  { %510 = dma.vmem_to_hbm [thread:$0]  %s508_s2, 128, %s878_s3, [#allocation4]   ;;  %v668_v0 = vpop.f32.mrf.mxu1 }
 0x363   :  { %793 = dma.done.wait [#allocation4], 128  }
 0x364   :  { %794 = vsyncadd [#allocation4], 4294967168 }
 0x365   :  { %514 = vsyncpa [#allocation3], 1 }
 0x366   :  { %515 = vsyncpa [#allocation6], 1 }
 0x367   :  { %516 = vsyncpa [#allocation4], 1 }

</bundles_post_ra>
